<compile_context>
chip_gen: v7x
topology: tpu7x:2x2x1
jax: 0.10.0
libtpu: 0.0.40
codegen_flags: <defaults>
</compile_context>

<pallas_src>
import functools

import jax
import jax.numpy as jnp
from jax.experimental import pallas as pl
from jax.experimental.pallas import tpu as pltpu


def _round_up(v, m=128):
    return ((v + m - 1) // m) * m


def ddqn_kernel(x_ref, w_ref, b_ref, out_ref, *, action_space, batch):
    x = x_ref[...]                                           # (B, L), zero-padded lanes

    # feature: relu(x @ W1 + b1)        (padded lanes of h stay exactly 0)
    h = jnp.dot(x, w_ref[0], preferred_element_type=jnp.float32) + b_ref[0:1, :]
    h = jnp.maximum(h, 0.0)

    # fused head hidden layer: cols [0,H) = relu(h@Wa1+ba1), cols [H,2H) = relu(h@Wv1+bv1)
    h2 = jnp.dot(h, w_ref[1], preferred_element_type=jnp.float32) + b_ref[1:2, :]
    h2 = jnp.maximum(h2, 0.0)

    # fused head output layer (block-diagonal packing):
    #   cols [0,A)  = adv,   col A = val,   cols > A = exactly 0
    z = jnp.dot(h2, w_ref[2], preferred_element_type=jnp.float32) + b_ref[2:3, :]

    col = jax.lax.broadcasted_iota(jnp.int32, z.shape, 1)

    # global scalar mean over the true (B, A) advantage entries only
    adv_sum = jnp.sum(jnp.where(col < action_space, z, 0.0))
    adv_mean = adv_sum * (1.0 / float(batch * action_space))

    # broadcast value column across lanes
    val = jnp.sum(jnp.where(col == action_space, z, 0.0), axis=-1, keepdims=True)  # (B, 1)

    # lane-dense store; only cols [0, A) are meaningful (wrapper slices them out)
    out_ref[...] = z + val - adv_mean


def pack_params(params, observation_space, neurons_per_layer, action_space):
    """Pack the 10 per-layer tensors into one weight slab and one bias slab.

    Weight slab  : (3, L, L) f32, zero-padded, L = 128-multiple >= max(obs, 2H, A+1)
      slab[0][:obs, :H]        = W1
      slab[1][:H,  :H]         = Wa1        slab[1][:H, H:2H]      = Wv1
      slab[2][:H,  :A]         = Wa2        slab[2][H:2H, A:A+1]   = Wv2
    Bias slab    : (3, L) f32, matching columns.
    """
    (w1, b1, wa1, ba1, wa2, ba2, wv1, bv1, wv2, bv2) = params
    obs, H, A = observation_space, neurons_per_layer, action_space
    L = _round_up(max(obs, 2 * H, A + 1))

    w = jnp.zeros((3, L, L), jnp.float32)
    w = w.at[0, :obs, :H].set(w1)
    w = w.at[1, :H, :H].set(wa1)
    w = w.at[1, :H, H:2 * H].set(wv1)
    w = w.at[2, :H, :A].set(wa2)
    w = w.at[2, H:2 * H, A:A + 1].set(wv2)

    b = jnp.zeros((3, L), jnp.float32)
    b = b.at[0, :H].set(b1[0])
    b = b.at[1, :H].set(ba1[0])
    b = b.at[1, H:2 * H].set(bv1[0])
    b = b.at[2, :A].set(ba2[0])
    b = b.at[2, A].set(bv2[0, 0])
    return w, b


def ddqn_forward(x, w_slab, b_slab, action_space):
    B = x.shape[0]
    L = w_slab.shape[-1]

    # zero-pad x lanes up to L (matches the zero-padded rows of W1)
    x_pad = jnp.zeros((B, L), jnp.float32).at[:, :x.shape[1]].set(x)

    vmem = pl.BlockSpec(memory_space=pltpu.MemorySpace.VMEM)
    kernel = functools.partial(ddqn_kernel, action_space=action_space, batch=B)

    out_padded = pl.pallas_call(
        kernel,
        out_shape=jax.ShapeDtypeStruct((B, L), jnp.float32),
        in_specs=[vmem, vmem, vmem],
        out_specs=vmem,
    )(x_pad, w_slab, b_slab)

    return out_padded[:, :action_space]


def init_params(key, observation_space, action_space, neurons_per_layer):
    """Deterministic init mimicking nn.Linear default (uniform +/- 1/sqrt(fan_in)).
    Weights stored as (in, out); biases as (1, out)."""
    def linear(key, fan_in, fan_out):
        kw, kb = jax.random.split(key)
        bound = 1.0 / jnp.sqrt(fan_in)
        w = jax.random.uniform(kw, (fan_in, fan_out), jnp.float32, -bound, bound)
        b = jax.random.uniform(kb, (1, fan_out), jnp.float32, -bound, bound)
        return w, b

    keys = jax.random.split(key, 5)
    w1, b1 = linear(keys[0], observation_space, neurons_per_layer)
    wa1, ba1 = linear(keys[1], neurons_per_layer, neurons_per_layer)
    wa2, ba2 = linear(keys[2], neurons_per_layer, action_space)
    wv1, bv1 = linear(keys[3], neurons_per_layer, neurons_per_layer)
    wv2, bv2 = linear(keys[4], neurons_per_layer, 1)
    return (w1, b1, wa1, ba1, wa2, ba2, wv1, bv1, wv2, bv2)


def ddqn_reference(x, params):
    """Pure-JAX reference matching the PyTorch forward exactly."""
    (w1, b1, wa1, ba1, wa2, ba2, wv1, bv1, wv2, bv2) = params
    h = jnp.maximum(x @ w1 + b1, 0.0)
    adv = jnp.maximum(h @ wa1 + ba1, 0.0) @ wa2 + ba2
    val = jnp.maximum(h @ wv1 + bv1, 0.0) @ wv2 + bv2
    return val + adv - adv.mean()


if __name__ == "__main__":
    observation_space = 8
    action_space = 4
    neurons_per_layer = 48
    batch = 2

    key = jax.random.PRNGKey(0)
    k_x, k_p = jax.random.split(key)
    x = jax.random.normal(k_x, (batch, observation_space), jnp.float32)
    params = init_params(k_p, observation_space, action_space, neurons_per_layer)
    w_slab, b_slab = pack_params(params, observation_space, neurons_per_layer, action_space)

    out = ddqn_forward(x, w_slab, b_slab, action_space)
    out = jax.block_until_ready(out)

    ref = ddqn_reference(x, params)
    assert out.shape == (batch, action_space)
    assert jnp.allclose(out, ref, atol=1e-5, rtol=1e-5), (out, ref)

    print("KERNEL_OK")
</pallas_src>

<mosaic_0001>
module attributes {stable_mosaic.version = 11 : i64} {
  func.func @ddqn_kernel(%arg0: memref<2x128xf32, #tpu.memory_space<vmem>>, %arg1: memref<3x128x128xf32, #tpu.memory_space<vmem>>, %arg2: memref<3x128xf32, #tpu.memory_space<vmem>>, %arg3: memref<2x128xf32, #tpu.memory_space<vmem>>) attributes {dimension_semantics = [], scalar_prefetch = 0 : i64, scratch_operands = 0 : i64, tpu.core_type = #tpu.core_type<tc>} {
    %c0 = arith.constant 0 : index
    %c0_0 = arith.constant 0 : index
    %0 = vector.load %arg0[%c0, %c0_0] : memref<2x128xf32, #tpu.memory_space<vmem>>, vector<2x128xf32>
    %c0_1 = arith.constant 0 : index
    %c0_2 = arith.constant 0 : index
    %c0_3 = arith.constant 0 : index
    %1 = vector.load %arg1[%c0_1, %c0_2, %c0_3] : memref<3x128x128xf32, #tpu.memory_space<vmem>>, vector<1x128x128xf32>
    %2 = vector.shape_cast %1 : vector<1x128x128xf32> to vector<128x128xf32>
    %cst = arith.constant dense<0.000000e+00> : vector<2x128xf32>
    %3 = tpu.matmul %0, %2, %cst {dimension_numbers = #tpu.dot_dimension_numbers<[1], [0], [0], [1], [0, 0, 1, 1], [], []>} : vector<2x128xf32>, vector<128x128xf32>, vector<2x128xf32> -> vector<2x128xf32>
    %c0_4 = arith.constant 0 : index
    %c0_5 = arith.constant 0 : index
    %4 = vector.load %arg2[%c0_4, %c0_5] : memref<3x128xf32, #tpu.memory_space<vmem>>, vector<1x128xf32>
    %5 = vector.broadcast %4 : vector<1x128xf32> to vector<2x128xf32>
    %6 = arith.addf %3, %5 : vector<2x128xf32>
    %cst_6 = arith.constant 0.000000e+00 : f32
    %7 = vector.broadcast %cst_6 : f32 to vector<2x128xf32>
    %8 = arith.maximumf %6, %7 : vector<2x128xf32>
    %c1 = arith.constant 1 : index
    %c0_7 = arith.constant 0 : index
    %c0_8 = arith.constant 0 : index
    %9 = vector.load %arg1[%c1, %c0_7, %c0_8] : memref<3x128x128xf32, #tpu.memory_space<vmem>>, vector<1x128x128xf32>
    %10 = vector.shape_cast %9 : vector<1x128x128xf32> to vector<128x128xf32>
    %cst_9 = arith.constant dense<0.000000e+00> : vector<2x128xf32>
    %11 = tpu.matmul %8, %10, %cst_9 {dimension_numbers = #tpu.dot_dimension_numbers<[1], [0], [0], [1], [0, 0, 1, 1], [], []>} : vector<2x128xf32>, vector<128x128xf32>, vector<2x128xf32> -> vector<2x128xf32>
    %c1_10 = arith.constant 1 : index
    %c0_11 = arith.constant 0 : index
    %12 = vector.load %arg2[%c1_10, %c0_11] : memref<3x128xf32, #tpu.memory_space<vmem>>, vector<1x128xf32>
    %13 = vector.broadcast %12 : vector<1x128xf32> to vector<2x128xf32>
    %14 = arith.addf %11, %13 : vector<2x128xf32>
    %cst_12 = arith.constant 0.000000e+00 : f32
    %15 = vector.broadcast %cst_12 : f32 to vector<2x128xf32>
    %16 = arith.maximumf %14, %15 : vector<2x128xf32>
    %c2 = arith.constant 2 : index
    %c0_13 = arith.constant 0 : index
    %c0_14 = arith.constant 0 : index
    %17 = vector.load %arg1[%c2, %c0_13, %c0_14] : memref<3x128x128xf32, #tpu.memory_space<vmem>>, vector<1x128x128xf32>
    %18 = vector.shape_cast %17 : vector<1x128x128xf32> to vector<128x128xf32>
    %cst_15 = arith.constant dense<0.000000e+00> : vector<2x128xf32>
    %19 = tpu.matmul %16, %18, %cst_15 {dimension_numbers = #tpu.dot_dimension_numbers<[1], [0], [0], [1], [0, 0, 1, 1], [], []>} : vector<2x128xf32>, vector<128x128xf32>, vector<2x128xf32> -> vector<2x128xf32>
    %c2_16 = arith.constant 2 : index
    %c0_17 = arith.constant 0 : index
    %20 = vector.load %arg2[%c2_16, %c0_17] : memref<3x128xf32, #tpu.memory_space<vmem>>, vector<1x128xf32>
    %21 = vector.broadcast %20 : vector<1x128xf32> to vector<2x128xf32>
    %22 = arith.addf %19, %21 : vector<2x128xf32>
    %23 = tpu.iota {dimensions = array<i32: 1>} : vector<2x128xi32>
    %c4_i32 = arith.constant 4 : i32
    %24 = vector.broadcast %c4_i32 : i32 to vector<2x128xi32>
    %25 = arith.cmpi slt, %23, %24 : vector<2x128xi32>
    %cst_18 = arith.constant 0.000000e+00 : f32
    %26 = vector.broadcast %cst_18 : f32 to vector<2x128xf32>
    %27 = arith.select %25, %22, %26 : vector<2x128xi1>, vector<2x128xf32>
    %28 = vector.shape_cast %27 : vector<2x128xf32> to vector<1x2x128xf32>
    %cst_19 = arith.constant dense<0.000000e+00> : vector<1xf32>
    %29 = vector.multi_reduction <add>, %28, %cst_19 [1, 2] : vector<1x2x128xf32> to vector<1xf32>
    %30 = vector.shape_cast %29 : vector<1xf32> to vector<1x1x1xf32>
    %31 = vector.extract %30[0, 0, 0] : f32 from vector<1x1x1xf32>
    %cst_20 = arith.constant 1.250000e-01 : f32
    %32 = arith.mulf %31, %cst_20 : f32
    %c4_i32_21 = arith.constant 4 : i32
    %33 = vector.broadcast %c4_i32_21 : i32 to vector<2x128xi32>
    %34 = arith.cmpi eq, %23, %33 : vector<2x128xi32>
    %cst_22 = arith.constant 0.000000e+00 : f32
    %35 = vector.broadcast %cst_22 : f32 to vector<2x128xf32>
    %36 = arith.select %34, %22, %35 : vector<2x128xi1>, vector<2x128xf32>
    %cst_23 = arith.constant dense<0.000000e+00> : vector<2xf32>
    %37 = vector.multi_reduction <add>, %36, %cst_23 [1] : vector<2x128xf32> to vector<2xf32>
    %38 = vector.shape_cast %37 : vector<2xf32> to vector<2x1xf32>
    %39 = vector.broadcast %38 : vector<2x1xf32> to vector<2x128xf32>
    %40 = arith.addf %22, %39 : vector<2x128xf32>
    %41 = vector.broadcast %32 : f32 to vector<2x128xf32>
    %42 = arith.subf %40, %41 : vector<2x128xf32>
    %c0_24 = arith.constant 0 : index
    %c0_25 = arith.constant 0 : index
    %43 = vector.load %arg3[%c0_24, %c0_25] : memref<2x128xf32, #tpu.memory_space<vmem>>, vector<2x128xf32>
    tpu.vector_store %arg3[%c0_24, %c0_25], %42 {strides = array<i32>} : memref<2x128xf32, #tpu.memory_space<vmem>>, vector<2x128xf32>,
    return
  }
}

</mosaic_0001>

<bundles_post_ra>
// kernel: tpu_custom_call.1
= control target key start
LH: loop header
LB: loop body
LE: loop exit
PB: predicated region body
PF: predicated region fallthrough
CT: control target
= control target key end

     0   :  { %8 = vsyncpa [#allocation3], 0  ;;  %s783_s0 = inlined_call_operand.hbm [shape: f32[2,128], index: 0, kind: input, shape index: {}]   ;;  %s784_s1 = inlined_call_operand.hbm [shape: f32[3,128,128], index: 1, kind: input, shape index: {}]   ;;  %s785_s2 = inlined_call_operand.vmem [shape: f32[3,128], index: 2, kind: input, shape index: {}]   ;;  %s786_s3 = inlined_call_operand.hbm [shape: f32[2,128], index: 3, kind: output, shape index: {}]  }
   0x1   :  { %9 = vsyncpa [#allocation6], 0 }
   0x2   :  { %10 = vsyncpa [#allocation4], 0  ;;  %s673_s12 = smov [#allocation2]   ;;  %s674_s14 = smov [#allocation5]  }
   0x3   :  { %s17_s13 = sshll.u32 %s673_s12, 4  ;;  %s26_s15 = sshll.u32 %s674_s14, 4  ;;  %s18_s13 = int_to_ptr.vmem [resolvable:$true] %s17_s13  ;;  %s701_s15 = int_to_ptr.vmem [resolvable:$true] %s26_s15 }
   0x4   :  { %s601_s18 = scalar_lea.hbm %s783_s0, 32 }
   0x5   :  { %p602_p0 = scmp.ne.s32.totalorder %s783_s0, %s601_s18  ;;  %p605_p1 = scmp.lt.u32.totalorder %s601_s18, %s783_s0 }
   0x7   :  { %p607_p2 = pnand %p605_p1, %p602_p0 }
   0x9   :  { %610 = shalt.err (!%p607_p2)
}
   0xa   :  { %s611_s23 = scalar_lea.vmem %s18_s13, 32  ;;  %p616_p4 = scmp.lt.s32.totalorder %s18_s13, %s18_s13 }
   0xb   :  { %p612_p3 = scmp.ne.s32.totalorder %s18_s13, %s611_s23  ;;  %p617_p5 = scmp.lt.s32.totalorder %s611_s23, %s611_s23 }
   0xd   :  { %p618_p6 = por %p617_p5, %p616_p4 }
   0xf   :  { %p619_p7 = pnand %p618_p6, %p612_p3 }
  0x11   :  { %622 = shalt.err (!%p619_p7)
}
  0x12   :  { %20 = dma.hbm_to_vmem [thread:$0]  %s783_s0, 32, %s18_s13, [#allocation3]  }
  0x13   :  { %s623_s28 = scalar_lea.hbm %s784_s1, 6144 }
  0x14   :  { %p624_p8 = scmp.ne.s32.totalorder %s784_s1, %s623_s28  ;;  %p627_p9 = scmp.lt.u32.totalorder %s623_s28, %s784_s1 }
  0x16   :  { %p629_p10 = pnand %p627_p9, %p624_p8 }
  0x18   :  { %632 = shalt.err (!%p629_p10)
}
  0x19   :  { %s633_s6 = scalar_lea.vmem %s701_s15, 6144  ;;  %p638_p12 = scmp.lt.s32.totalorder %s701_s15, %s701_s15 }
  0x1a   :  { %p634_p11 = scmp.ne.s32.totalorder %s701_s15, %s633_s6  ;;  %p639_p13 = scmp.lt.s32.totalorder %s633_s6, %s633_s6 }
  0x1c   :  { %p640_p0 = por %p639_p13, %p638_p12 }
  0x1e   :  { %p641_p1 = pnand %p640_p0, %p634_p11 }
  0x20   :  { %644 = shalt.err (!%p641_p1)
}
  0x21   :  { %s675_s0 = smov 128   ;;  %s676_s7 = smov 8  }
  0x22   :  { %32 = dma.hbm_to_vmem [thread:$0]  %s784_s1, 6144, %s701_s15, [#allocation6], %s675_s0, %s675_s0, %s676_s7  }
  0x23   :  { %667 = dma.done.wait [#allocation3], 32  }
  0x24   :  { %668 = vsyncadd [#allocation3], 4294967264 }
  0x25   :  { %669 = dma.done.wait [#allocation6], 6144  }
  0x26   :  { %670 = vsyncadd [#allocation6], 4294961152  ;;  %v677_v0 = vmov 0.0|0.0   ;;  %vm678_vm0 = vmmov 0   ;;  %v679_v1 = vmov 0.0   ;;  %v42_v2 = vld [vmem:[#allocation5] sm:$0xff] }
  0x27   :  { %519 = vmatprep.subr.bf16.mxu0 %v677_v0  ;;  %446 = vmatprep.mubr.msk.f32.mxu0 %vm678_vm0, %v679_v1  ;;  %v43_v3 = vld [vmem:[#allocation5 + $0x8] sm:$0xff]  ;;  %v44_v4 = vld [vmem:[#allocation5 + $0x10] sm:$0xff]  ;;  %v45_v6 = vld [vmem:[#allocation5 + $0x18] sm:$0xff]  ;;  %vm323_vm2 = vcmask 1041408   ;;  %s680_s16 = smov [#allocation7]  }
  0x28   :  { %543 = vmatprep.subr.bf16.mxu1 %v677_v0  ;;  %481 = vmatprep.mubr.msk.f32.mxu1 %vm678_vm0, %v679_v1  ;;  %v520_v5 = vpack.c.bf16 %v43_v3, %v42_v2  ;;  %v523_v7 = vpack.c.bf16 %v45_v6, %v44_v4  ;;  %v46_v8 = vld [vmem:[#allocation5 + $0x20] sm:$0xff]  ;;  %v47_v9 = vld [vmem:[#allocation5 + $0x28] sm:$0xff]  ;;  %v137_v12 = vld [vmem:[#allocation5 + $0x90] sm:$0xff]  ;;  %s350_s17 = sshll.u32 %s680_s16, 4  ;;  %s351_s17 = int_to_ptr.vmem [resolvable:$true] %s350_s17 }
  0x29   :  { %v135_v10 = vld [vmem:[#allocation5 + $0x80] sm:$0xff]  ;;  %v136_v11 = vld [vmem:[#allocation5 + $0x88] sm:$0xff]  ;;  %v138_v13 = vld [vmem:[#allocation5 + $0x98] sm:$0xff]  ;;  %v526_v14 = vpack.c.bf16 %v47_v9, %v46_v8  ;;  %s645_s18 = scalar_lea.vmem %s351_s17, 32  ;;  %p650_p3 = scmp.lt.s32.totalorder %s351_s17, %s351_s17 }
  0x2a   :  { %521 = vmatpush3.bf16.msra.mxu0 %v520_v5  ;;  %v544_v15 = vpack.c.bf16 %v136_v11, %v135_v10  ;;  %v48_v16 = vld [vmem:[#allocation5 + $0x30] sm:$0xff]  ;;  %v49_v17 = vld [vmem:[#allocation5 + $0x38] sm:$0xff]  ;;  %v547_v18 = vpack.c.bf16 %v138_v13, %v137_v12  ;;  %v139_v19 = vld [vmem:[#allocation5 + $0xa0] sm:$0xff]  ;;  %p646_p2 = scmp.ne.s32.totalorder %s351_s17, %s645_s18  ;;  %p651_p4 = scmp.lt.s32.totalorder %s645_s18, %s645_s18 }
  0x2b   :  { %522 = vmatprep.subr.bf16.mxu0 %v677_v0  ;;  %v140_v20 = vld [vmem:[#allocation5 + $0xa8] sm:$0xff]  ;;  %v529_v21 = vpack.c.bf16 %v49_v17, %v48_v16  ;;  %v50_v22 = vld [vmem:[#allocation5 + $0x40] sm:$0xff]  ;;  %v141_v25 = vld [vmem:[#allocation5 + $0xb0] sm:$0xff] }
  0x2c   :  { %545 = vmatpush3.bf16.msra.mxu1 %v544_v15  ;;  %v51_v23 = vld [vmem:[#allocation5 + $0x48] sm:$0xff]  ;;  %v550_v24 = vpack.c.bf16 %v140_v20, %v139_v19  ;;  %v142_v26 = vld [vmem:[#allocation5 + $0xb8] sm:$0xff]  ;;  %v52_v28 = vld [vmem:[#allocation5 + $0x50] sm:$0xff]  ;;  %p652_p5 = por %p651_p4, %p650_p3 }
  0x2d   :  { %546 = vmatprep.subr.bf16.mxu1 %v677_v0  ;;  %v532_v27 = vpack.c.bf16 %v51_v23, %v50_v22  ;;  %v53_v29 = vld [vmem:[#allocation5 + $0x58] sm:$0xff]  ;;  %v553_v30 = vpack.c.bf16 %v142_v26, %v141_v25  ;;  %v143_v31 = vld [vmem:[#allocation5 + $0xc0] sm:$0xff]  ;;  %v144_v32 = vld [vmem:[#allocation5 + $0xc8] sm:$0xff] }
  0x2e   :  { %524 = vmatpush3.bf16.msra.mxu0 %v523_v7  ;;  %v535_v33 = vpack.c.bf16 %v53_v29, %v52_v28  ;;  %v54_v34 = vld [vmem:[#allocation5 + $0x60] sm:$0xff]  ;;  %v55_v35 = vld [vmem:[#allocation5 + $0x68] sm:$0xff]  ;;  %v556_v36 = vpack.c.bf16 %v144_v32, %v143_v31  ;;  %v145_v37 = vld [vmem:[#allocation5 + $0xd0] sm:$0xff]  ;;  %p653_p6 = pnand %p652_p5, %p646_p2 }
  0x2f   :  { %525 = vmatprep.subr.bf16.mxu0 %v677_v0  ;;  %v146_v38 = vld [vmem:[#allocation5 + $0xd8] sm:$0xff]  ;;  %v538_v39 = vpack.c.bf16 %v55_v35, %v54_v34  ;;  %v56_v40 = vld [vmem:[#allocation5 + $0x70] sm:$0xff]  ;;  %v147_v43 = vld [vmem:[#allocation5 + $0xe0] sm:$0xff] }
  0x30   :  { %548 = vmatpush3.bf16.msra.mxu1 %v547_v18  ;;  %v57_v41 = vld [vmem:[#allocation5 + $0x78] sm:$0xff]  ;;  %v559_v42 = vpack.c.bf16 %v146_v38, %v145_v37  ;;  %v148_v44 = vld [vmem:[#allocation5 + $0xe8] sm:$0xff]  ;;  %v149_v48 = vld [vmem:[#allocation5 + $0xf0] sm:$0xff] }
  0x31   :  { %549 = vmatprep.subr.bf16.mxu1 %v677_v0  ;;  %v541_v45 = vpack.c.bf16 %v57_v41, %v56_v40  ;;  %v562_v46 = vpack.c.bf16 %v148_v44, %v147_v43  ;;  %v41_v47 = vld [vmem:[#allocation2] sm:$0x3]  ;;  %v228_v51 = vld [vmem:[#allocation5 + $0x100] sm:$0xff]  ;;  %v229_v52 = vld [vmem:[#allocation5 + $0x108] sm:$0xff] }
  0x32   :  { %527 = vmatpush3.bf16.msra.mxu0 %v526_v14  ;;  %v150_v49 = vld [vmem:[#allocation5 + $0xf8] sm:$0xff]  ;;  %v230_v53 = vld [vmem:[#allocation5 + $0x110] sm:$0xff]  ;;  %v568_v54 = vpack.c.bf16 %v229_v52, %v228_v51  ;;  %v232_v57 = vld [vmem:[#allocation5 + $0x120] sm:$0xff] }
  0x33   :  { %528 = vmatprep.subr.bf16.mxu0 %v677_v0  ;;  %v565_v50 = vpack.c.bf16 %v150_v49, %v149_v48  ;;  %v231_v55 = vld [vmem:[#allocation5 + $0x118] sm:$0xff]  ;;  %v233_v58 = vld [vmem:[#allocation5 + $0x128] sm:$0xff]  ;;  %v234_v60 = vld [vmem:[#allocation5 + $0x130] sm:$0xff] }
  0x34   :  { %551 = vmatpush3.bf16.msra.mxu1 %v550_v24  ;;  %v571_v56 = vpack.c.bf16 %v231_v55, %v230_v53  ;;  %v574_v59 = vpack.c.bf16 %v233_v58, %v232_v57  ;;  %v235_v61 = vld [vmem:[#allocation5 + $0x138] sm:$0xff]  ;;  %v236_v63 = vld [vmem:[#allocation5 + $0x140] sm:$0xff]  ;;  %v238_v3 = vld [vmem:[#allocation5 + $0x150] sm:$0xff] }
  0x35   :  { %552 = vmatprep.subr.bf16.mxu1 %v677_v0  ;;  %v577_v62 = vpack.c.bf16 %v235_v61, %v234_v60  ;;  %v239_v4 = vld [vmem:[#allocation5 + $0x158] sm:$0xff]  ;;  %v240_v6 = vld [vmem:[#allocation5 + $0x160] sm:$0xff]  ;;  %v241_v7 = vld [vmem:[#allocation5 + $0x168] sm:$0xff] }
  0x36   :  { %530 = vmatpush3.bf16.msra.mxu0 %v529_v21  ;;  %v583_v5 = vpack.c.bf16 %v239_v4, %v238_v3  ;;  %v586_v8 = vpack.c.bf16 %v241_v7, %v240_v6  ;;  %v360_v9 = vld [vmem:[%s785_s2] ss:$0 sm:$0xff]  ;;  %v243_v15 = vld [vmem:[#allocation5 + $0x178] sm:$0xff]  ;;  %v361_v17 = vld [vmem:[%s785_s2 + $0x1] ss:$0 sm:$0xff]  ;;  %v319_v21 = vlaneseq }
  0x37   :  { %531 = vmatprep.subr.bf16.mxu0 %v677_v0  ;;  %v242_v14 = vld [vmem:[#allocation5 + $0x170] sm:$0xff]  ;;  %v362_v23 = vld [vmem:[%s785_s2 + $0x2] ss:$0 sm:$0xff] }
  0x38   :  { %554 = vmatpush3.bf16.msra.mxu1 %v553_v30  ;;  %v589_v16 = vpack.c.bf16 %v243_v15, %v242_v14  ;;  %v320_v22 = vand.u32 127, %v319_v21 }
  0x39   :  { %555 = vmatprep.subr.bf16.mxu1 %v677_v0 }
  0x3a   :  { %533 = vmatpush3.bf16.msra.mxu0 %v532_v27  ;;  %vm321_vm1 = vcmp.lt.s32.totalorder %v320_v22, 4  ;;  %vm335_vm3 = vcmp.eq.s32.totalorder %v320_v22, 4 }
  0x3b   :  { %534 = vmatprep.subr.bf16.mxu0 %v677_v0 }
  0x3c   :  { %557 = vmatpush3.bf16.msra.mxu1 %v556_v36 }
  0x3d   :  { %558 = vmatprep.subr.bf16.mxu1 %v677_v0 }
  0x3e   :  { %536 = vmatpush3.bf16.msra.mxu0 %v535_v33 }
  0x3f   :  { %537 = vmatprep.subr.bf16.mxu0 %v677_v0 }
  0x40   :  { %560 = vmatpush3.bf16.msra.mxu1 %v559_v42 }
  0x41   :  { %561 = vmatprep.subr.bf16.mxu1 %v677_v0 }
  0x42   :  { %539 = vmatpush3.bf16.msra.mxu0 %v538_v39 }
  0x43   :  { %540 = vmatprep.subr.bf16.mxu0 %v677_v0 }
  0x44   :  { %563 = vmatpush3.bf16.msra.mxu1 %v562_v46 }
  0x45   :  { %564 = vmatprep.subr.bf16.mxu1 %v677_v0 }
  0x46   :  { %542 = vmatpush3.bf16.msra.mxu0 %v541_v45 }
  0x47   :  { %567 = vmatprep.subr.bf16.mxu0 %v677_v0 }
  0x48   :  { %566 = vmatpush3.bf16.msra.mxu1 %v565_v50 }
  0x49   :  { %447 = vmatmul.mubr.f32.vlgmr.msra.gmra.mrb[0].mxu0 %v41_v47 }
  0x4a   :  { %516 = vmatprep.mubr.msk.f32.mxu0 %vm678_vm0, %v679_v1  ;;  %569 = vmatpush3.bf16.msra.mxu0 %v568_v54  ;;  %v237_v1 = vld [vmem:[#allocation5 + $0x148] sm:$0xff] }
  0x4b   :  { %570 = vmatprep.subr.bf16.mxu0 %v677_v0  ;;  %v580_v2 = vpack.c.bf16 %v237_v1, %v236_v63 }
  0x4e   :  { %572 = vmatpush3.bf16.msra.mxu0 %v571_v56 }
  0x4f   :  { %573 = vmatprep.subr.bf16.mxu0 %v677_v0 }
  0x52   :  { %575 = vmatpush3.bf16.msra.mxu0 %v574_v59 }
  0x53   :  { %576 = vmatprep.subr.bf16.mxu0 %v677_v0 }
  0x56   :  { %578 = vmatpush3.bf16.msra.mxu0 %v577_v62 }
  0x57   :  { %579 = vmatprep.subr.bf16.mxu0 %v677_v0 }
  0x5a   :  { %581 = vmatpush3.bf16.msra.mxu0 %v580_v2 }
  0x5b   :  { %582 = vmatprep.subr.bf16.mxu0 %v677_v0 }
  0x5e   :  { %584 = vmatpush3.bf16.msra.mxu0 %v583_v5 }
  0x5f   :  { %585 = vmatprep.subr.bf16.mxu0 %v677_v0 }
  0x62   :  { %587 = vmatpush3.bf16.msra.mxu0 %v586_v8 }
  0x63   :  { %588 = vmatprep.subr.bf16.mxu0 %v677_v0 }
  0x66   :  { %590 = vmatpush3.bf16.msra.mxu0 %v589_v16 }
 0x11c   :  { %v129_v10 = vpop.f32.mrb[0].mxu0 }
 0x11d   :  { %v130_v11 = vadd.f32 %v360_v9, %v129_v10  ;;  %v448_v12 = vpop.f32.mrb[1].mxu0 }
 0x11f   :  { %v133_v13 = vmax.f32 %v130_v11, 0.0 }
 0x121   :  { %482 = vmatmul.mubr.f32.vlgmr.msra.gmra.mrb[0].mxu1 %v133_v13 }
 0x1f4   :  { %v222_v18 = vpop.f32.mrb[0].mxu1 }
 0x1f5   :  { %v223_v19 = vadd.f32 %v361_v17, %v222_v18  ;;  %v483_v0 = vpop.f32.mrb[1].mxu1 }
 0x1f7   :  { %v226_v20 = vmax.f32 %v223_v19, 0.0 }
 0x1f9   :  { %517 = vmatmul.mubr.f32.vlgmr.msra.gmra.mrb[2].mxu0 %v226_v20 }
 0x2cc   :  { %v315_v24 = vpop.f32.mrb[2].mxu0 }
 0x2cd   :  { %v316_v25 = vadd.f32 %v362_v23, %v315_v24  ;;  %v518_v26 = vpop.f32.mrb[3].mxu0 }
 0x2cf   :  { %v322_v27 = vsel %vm321_vm1, %v316_v25, 0.0  ;;  %v336_v29 = vsel %vm335_vm3, %v316_v25, 0.0 }
 0x2d0   :  { %v324_v28 = vsel %vm323_vm2, %v322_v27, 0.0  ;;  %v337_v30 = vsel %vm323_vm2, %v336_v29, 0.0 }
 0x2d1   :  { %325 = vadd.xlane.f32.xlu0 %v324_v28 }
 0x2d5   :  { %338 = vadd.xlane.f32.xlu0 %v337_v30 }
 0x35e   :  { %v326_v31 = vpop.xlane.xlu0 %325 }
 0x35f   :  { %v327_v32 = vrot.slane %v326_v31, 4 }
 0x361   :  { %v328_v33 = vadd.f32 %v327_v32, %v326_v31 }
 0x362   :  { %v339_v38 = vpop.xlane.xlu0 %338 }
 0x363   :  { %v329_v34 = vrot.slane %v328_v33, 2  ;;  %v340_v39 = vadd.f32 %v339_v38, %v316_v25 }
 0x365   :  { %v330_v35 = vadd.f32 %v329_v34, %v328_v33 }
 0x367   :  { %v331_v36 = vrot.slane %v330_v35, 1 }
 0x369   :  { %v332_v37 = vadd.f32 %v331_v36, %v330_v35 }
 0x36b   :  { %591 = vpush %v332_v37 }
 0x39c   :  { %s592_s2 = spop %591 }
 0x39d   :  { %s334_s15 = smul.f32 0.125, %s592_s2 }
 0x39f   :  { %v341_v40 = vstv %s334_s15 }
 0x3a0   :  { %v342_v41 = vsub.f32 %v340_v39, %v341_v40 }
 0x3a2   :  { %343 = vst [vmem:[#allocation7] sm:$0x3] %v342_v41 }
 0x3a3   :  { %656 = shalt.err (!%p653_p6)
}
 0x3a4   :  { %s657_s21 = scalar_lea.hbm %s786_s3, 32 }
 0x3a5   :  { %p658_p7 = scmp.ne.s32.totalorder %s786_s3, %s657_s21  ;;  %p661_p8 = scmp.lt.u32.totalorder %s657_s21, %s786_s3 }
 0x3a7   :  { %p663_p9 = pnand %p661_p8, %p658_p7 }
 0x3a9   :  { %666 = shalt.err (!%p663_p9)
}
 0x3aa   :  { %353 = dma.vmem_to_hbm [thread:$0]  %s351_s17, 32, %s786_s3, [#allocation4]  }
 0x3ab   :  { %671 = dma.done.wait [#allocation4], 32  }
 0x3ac   :  { %672 = vsyncadd [#allocation4], 4294967264 }
 0x3ad   :  { %357 = vsyncpa [#allocation3], 1 }
 0x3ae   :  { %358 = vsyncpa [#allocation6], 1 }
 0x3af   :  { %359 = vsyncpa [#allocation4], 1 }

</bundles_post_ra>
